<compile_context>
chip_gen: v6e
topology: v6e:2x2x1
jax: 0.10.0
libtpu: 0.0.40
codegen_flags: <defaults>
</compile_context>

<pallas_src>
import functools

import jax
import jax.numpy as jnp
from jax import lax
from jax.experimental import pallas as pl
from jax.experimental.pallas import tpu as pltpu


def _loss_kernel(x_ref, a_ref, tgt_ref, w_ref, b_ref, out_ref, *,
                 batch_true, block_b):
    """Per-batch-block partial sums of the CE and explanation terms."""
    i = pl.program_id(0)

    x = x_ref[...]                              # (TB, D)  MXU dtype (f32/bf16)
    w = w_ref[...]                              # (D, C)   MXU dtype
    a = a_ref[...].astype(jnp.float32)          # (TB, D)  annotation mask
    b = b_ref[...].astype(jnp.float32)          # (1, C)
    t = tgt_ref[...]                            # (TB, 1)  int32 labels

    TB = block_b
    C = w.shape[1]

    # logits = x @ W + b  (MXU, f32 accumulate)
    logits = jnp.dot(x, w, preferred_element_type=jnp.float32) + b   # (TB, C)

    # numerically stable softmax / log-softmax; all elementwise math in f32
    m = jnp.max(logits, axis=-1, keepdims=True)
    ez = jnp.exp(logits - m)
    se = jnp.sum(ez, axis=-1, keepdims=True)
    p = ez * pl.reciprocal(se, approx=True)     # EUP reciprocal, frees VPU slot
    logp = logits - m - jnp.log(se)             # (TB, C)

    # row validity (handles padded batch tail) and in-kernel one-hot mask
    row = i * TB + lax.broadcasted_iota(jnp.int32, (TB, 1), 0)
    valid = row < batch_true                                        # (TB, 1)
    label = lax.broadcasted_iota(jnp.int32, (TB, C), 1) == t        # (TB, C)

    ce_part = -jnp.sum(jnp.where(label & valid, logp, 0.0))

    # d(sum_j log_softmax_j)/dx = (1 - C*softmax) @ W^T : contract over C
    # directly with dot_general (no materialized transpose of W).
    coef = 1.0 - C * p                                              # (TB, C) f32
    g = lax.dot_general(coef.astype(w.dtype), w,
                        dimension_numbers=(((1,), (1,)), ((), ())),
                        preferred_element_type=jnp.float32)         # (TB, D)

    # explanation penalty partial sum (padded rows contribute 0 since a == 0)
    expl_part = jnp.sum(a * g * g)

    # single lane-dense (8,128) output tile per block:
    # lanes [0,64) carry ce_part, lanes [64,128) carry expl_part (broadcast).
    lane = lax.broadcasted_iota(jnp.int32, (8, 128), 1)
    out_ref[0] = jnp.where(lane < 64, ce_part, expl_part)


def loss_function_interpret(x, w, b, target, A, lambda_explanation=1000.0,
                            block_b=16, mxu_dtype=jnp.float32):
    """Returns (loss_total, loss_ce, loss_explanation)."""
    B, D = x.shape
    C = w.shape[1]

    nb = pl.cdiv(B, block_b)
    Bp = nb * block_b
    pad = Bp - B

    xf = x.astype(mxu_dtype)
    af = A.astype(mxu_dtype)
    tf = target.astype(jnp.int32)
    if pad:
        xf = jnp.pad(xf, ((0, pad), (0, 0)))
        af = jnp.pad(af, ((0, pad), (0, 0)))
        tf = jnp.pad(tf, (0, pad))
    tf = tf.reshape(Bp, 1)
    wf = w.astype(mxu_dtype)
    bf = b.reshape(1, C).astype(jnp.float32)

    kernel = functools.partial(_loss_kernel, batch_true=B, block_b=block_b)

    partials = pl.pallas_call(
        kernel,
        out_shape=jax.ShapeDtypeStruct((nb, 8, 128), jnp.float32),
        grid=(nb,),
        in_specs=[
            pl.BlockSpec((block_b, D), lambda i: (i, 0)),   # x tile
            pl.BlockSpec((block_b, D), lambda i: (i, 0)),   # A tile
            pl.BlockSpec((block_b, 1), lambda i: (i, 0)),   # int32 labels
            pl.BlockSpec((D, C), lambda i: (0, 0)),         # W (block-invariant)
            pl.BlockSpec((1, C), lambda i: (0, 0)),         # bias
        ],
        out_specs=pl.BlockSpec((1, 8, 128), lambda i: (i, 0, 0)),
        compiler_params=pltpu.CompilerParams(
            dimension_semantics=("parallel",),
            vmem_limit_bytes=32 * 1024 * 1024),
    )(xf, af, tf, wf, bf)

    loss_ce = jnp.sum(partials[:, 0, 0]) / B
    loss_expl = lambda_explanation * jnp.sum(partials[:, 0, 64]) / B
    return loss_ce + loss_expl, loss_ce, loss_expl


def _reference(x, w, b, target, A, lambda_explanation=1000.0):
    """Pure-JAX reference using autodiff for the input gradients."""
    def model(xx):
        return xx @ w + b

    logits = model(x)
    logp = jax.nn.log_softmax(logits, axis=1)
    B, _ = logits.shape
    loss_ce = -jnp.mean(logp[jnp.arange(B), target])

    def sum_log_probs(xx):
        return jnp.sum(jax.nn.log_softmax(model(xx), axis=1))

    grads = jax.grad(sum_log_probs)(x)
    loss_expl = lambda_explanation * jnp.sum(A * grads ** 2) / B
    return loss_ce + loss_expl, loss_ce, loss_expl


if __name__ == "__main__":
    key = jax.random.PRNGKey(0)
    kx, kw, kb, kt, ka = jax.random.split(key, 5)

    B, D, C = 64, 32, 4   # batch, input_dim, num_classes

    x = jax.random.normal(kx, (B, D), dtype=jnp.float32)
    w = jax.random.normal(kw, (D, C), dtype=jnp.float32) * 0.1
    b = jax.random.normal(kb, (C,), dtype=jnp.float32) * 0.01
    target = jax.random.randint(kt, (B,), 0, C)
    A = jax.random.bernoulli(ka, 0.3, (B, D)).astype(jnp.float32)
    lam = 1000.0

    # --- f32 path, batch tiled (grid of 4 parallel blocks) ---
    total, ce, expl = loss_function_interpret(x, w, b, target, A, lam,
                                              block_b=16)
    total = jax.block_until_ready(total)
    ref_total, ref_ce, ref_expl = _reference(x, w, b, target, A, lam)

    assert jnp.allclose(ce, ref_ce, rtol=1e-4, atol=1e-5), (ce, ref_ce)
    assert jnp.allclose(expl, ref_expl, rtol=5e-3, atol=1e-2), (expl, ref_expl)
    assert jnp.allclose(total, ref_total, rtol=5e-3, atol=1e-2), (total, ref_total)

    # --- ragged batch (B not a multiple of the tile -> padded + masked rows) ---
    B2 = 10
    x2, A2, t2 = x[:B2], A[:B2], target[:B2]
    total2, ce2, expl2 = loss_function_interpret(x2, w, b, t2, A2, lam,
                                                 block_b=16)
    jax.block_until_ready(total2)
    ref_total2, ref_ce2, ref_expl2 = _reference(x2, w, b, t2, A2, lam)
    assert jnp.allclose(ce2, ref_ce2, rtol=1e-4, atol=1e-5), (ce2, ref_ce2)
    assert jnp.allclose(total2, ref_total2, rtol=5e-3, atol=1e-2), (total2, ref_total2)

    # --- bf16 MXU-input path (halves HBM traffic for x/A/W on v5e/v6e) ---
    total3, ce3, expl3 = loss_function_interpret(x, w, b, target, A, lam,
                                                 block_b=16,
                                                 mxu_dtype=jnp.bfloat16)
    jax.block_until_ready(total3)
    assert jnp.allclose(ce3, ref_ce, rtol=5e-2, atol=1e-2), (ce3, ref_ce)
    assert jnp.allclose(total3, ref_total, rtol=5e-2, atol=0.5), (total3, ref_total)

    print("KERNEL_OK")
</pallas_src>

<mosaic_0001>
module attributes {stable_mosaic.version = 11 : i64} {
  func.func @_loss_kernel(%arg0: i32, %arg1: memref<16x32xf32, #tpu.memory_space<vmem>>, %arg2: memref<16x32xf32, #tpu.memory_space<vmem>>, %arg3: memref<16x1xi32, #tpu.memory_space<vmem>>, %arg4: memref<32x4xf32, #tpu.memory_space<vmem>>, %arg5: memref<1x4xf32, #tpu.memory_space<vmem>>, %arg6: memref<1x8x128xf32, #tpu.memory_space<vmem>>) attributes {dimension_semantics = [#tpu.dimension_semantics<parallel>], iteration_bounds = array<i64: 4>, scalar_prefetch = 0 : i64, scratch_operands = 0 : i64, tpu.core_type = #tpu.core_type<tc>, window_params = [{transform_indices = @transform_0, window_bounds = array<i64: 16, 32>}, {transform_indices = @transform_1, window_bounds = array<i64: 16, 32>}, {transform_indices = @transform_2, window_bounds = array<i64: 16, 1>}, {pipeline_mode = #tpu.pipeline_mode<synchronous>, transform_indices = @transform_3, window_bounds = array<i64: 32, 4>}, {pipeline_mode = #tpu.pipeline_mode<synchronous>, transform_indices = @transform_4, window_bounds = array<i64: 1, 4>}, {transform_indices = @transform_5, window_bounds = array<i64: 1, 8, 128>}]} {
    %c0 = arith.constant 0 : index
    %c0_0 = arith.constant 0 : index
    %0 = vector.load %arg1[%c0, %c0_0] : memref<16x32xf32, #tpu.memory_space<vmem>>, vector<16x32xf32>
    %c0_1 = arith.constant 0 : index
    %c0_2 = arith.constant 0 : index
    %1 = vector.load %arg4[%c0_1, %c0_2] : memref<32x4xf32, #tpu.memory_space<vmem>>, vector<32x4xf32>
    %c0_3 = arith.constant 0 : index
    %c0_4 = arith.constant 0 : index
    %2 = vector.load %arg2[%c0_3, %c0_4] : memref<16x32xf32, #tpu.memory_space<vmem>>, vector<16x32xf32>
    %c0_5 = arith.constant 0 : index
    %c0_6 = arith.constant 0 : index
    %3 = vector.load %arg5[%c0_5, %c0_6] : memref<1x4xf32, #tpu.memory_space<vmem>>, vector<1x4xf32>
    %c0_7 = arith.constant 0 : index
    %c0_8 = arith.constant 0 : index
    %4 = vector.load %arg3[%c0_7, %c0_8] : memref<16x1xi32, #tpu.memory_space<vmem>>, vector<16x1xi32>
    %cst = arith.constant dense<0.000000e+00> : vector<16x4xf32>
    %5 = tpu.matmul %0, %1, %cst {dimension_numbers = #tpu.dot_dimension_numbers<[1], [0], [0], [1], [0, 0, 1, 1], [], []>} : vector<16x32xf32>, vector<32x4xf32>, vector<16x4xf32> -> vector<16x4xf32>
    %6 = vector.broadcast %3 : vector<1x4xf32> to vector<16x4xf32>
    %7 = arith.addf %5, %6 : vector<16x4xf32>
    %cst_9 = arith.constant dense<0xFF800000> : vector<16xf32>
    %8 = vector.multi_reduction <maximumf>, %7, %cst_9 [1] : vector<16x4xf32> to vector<16xf32>
    %9 = vector.shape_cast %8 : vector<16xf32> to vector<16x1xf32>
    %10 = vector.broadcast %9 : vector<16x1xf32> to vector<16x4xf32>
    %11 = arith.subf %7, %10 : vector<16x4xf32>
    %12 = math.exp %11 : vector<16x4xf32>
    %cst_10 = arith.constant dense<0.000000e+00> : vector<16xf32>
    %13 = vector.multi_reduction <add>, %12, %cst_10 [1] : vector<16x4xf32> to vector<16xf32>
    %14 = vector.shape_cast %13 : vector<16xf32> to vector<16x1xf32>
    %15 = tpu.reciprocal %14 {approx = true} : vector<16x1xf32> -> vector<16x1xf32>
    %16 = vector.broadcast %15 : vector<16x1xf32> to vector<16x4xf32>
    %17 = arith.mulf %12, %16 : vector<16x4xf32>
    %18 = vector.broadcast %9 : vector<16x1xf32> to vector<16x4xf32>
    %19 = arith.subf %7, %18 : vector<16x4xf32>
    %20 = math.log %14 : vector<16x1xf32>
    %21 = vector.broadcast %20 : vector<16x1xf32> to vector<16x4xf32>
    %22 = arith.subf %19, %21 : vector<16x4xf32>
    %c16_i32 = arith.constant 16 : i32
    %23 = arith.muli %arg0, %c16_i32 : i32
    %24 = tpu.iota {dimensions = array<i32: 0>} : vector<16x1xi32>
    %25 = vector.broadcast %23 : i32 to vector<16x1xi32>
    %26 = arith.addi %25, %24 : vector<16x1xi32>
    %c64_i32 = arith.constant 64 : i32
    %27 = vector.broadcast %c64_i32 : i32 to vector<16x1xi32>
    %28 = arith.cmpi slt, %26, %27 : vector<16x1xi32>
    %29 = tpu.iota {dimensions = array<i32: 1>} : vector<16x4xi32>
    %30 = vector.broadcast %4 : vector<16x1xi32> to vector<16x4xi32>
    %31 = arith.cmpi eq, %29, %30 : vector<16x4xi32>
    %32 = vector.broadcast %28 : vector<16x1xi1> to vector<16x4xi1>
    %33 = arith.andi %31, %32 : vector<16x4xi1>
    %cst_11 = arith.constant 0.000000e+00 : f32
    %34 = vector.broadcast %cst_11 : f32 to vector<16x4xf32>
    %35 = arith.select %33, %22, %34 : vector<16x4xi1>, vector<16x4xf32>
    %36 = vector.shape_cast %35 : vector<16x4xf32> to vector<1x16x4xf32>
    %cst_12 = arith.constant dense<0.000000e+00> : vector<1xf32>
    %37 = vector.multi_reduction <add>, %36, %cst_12 [1, 2] : vector<1x16x4xf32> to vector<1xf32>
    %38 = vector.shape_cast %37 : vector<1xf32> to vector<1x1x1xf32>
    %39 = vector.extract %38[0, 0, 0] : f32 from vector<1x1x1xf32>
    %cst_13 = arith.constant 0.000000e+00 : f32
    %40 = arith.subf %cst_13, %39 : f32
    %cst_14 = arith.constant 4.000000e+00 : f32
    %41 = vector.broadcast %cst_14 : f32 to vector<16x4xf32>
    %42 = arith.mulf %41, %17 : vector<16x4xf32>
    %cst_15 = arith.constant 1.000000e+00 : f32
    %43 = vector.broadcast %cst_15 : f32 to vector<16x4xf32>
    %44 = arith.subf %43, %42 : vector<16x4xf32>
    %cst_16 = arith.constant dense<0.000000e+00> : vector<16x32xf32>
    %45 = tpu.matmul %44, %1, %cst_16 {dimension_numbers = #tpu.dot_dimension_numbers<[1], [1], [0], [0], [0, 0, 1, 0], [], []>} : vector<16x4xf32>, vector<32x4xf32>, vector<16x32xf32> -> vector<16x32xf32>
    %46 = arith.mulf %2, %45 : vector<16x32xf32>
    %47 = arith.mulf %46, %45 : vector<16x32xf32>
    %48 = vector.shape_cast %47 : vector<16x32xf32> to vector<1x16x32xf32>
    %cst_17 = arith.constant dense<0.000000e+00> : vector<1xf32>
    %49 = vector.multi_reduction <add>, %48, %cst_17 [1, 2] : vector<1x16x32xf32> to vector<1xf32>
    %50 = vector.shape_cast %49 : vector<1xf32> to vector<1x1x1xf32>
    %51 = vector.extract %50[0, 0, 0] : f32 from vector<1x1x1xf32>
    %52 = tpu.iota {dimensions = array<i32: 1>} : vector<8x128xi32>
    %c64_i32_18 = arith.constant 64 : i32
    %53 = vector.broadcast %c64_i32_18 : i32 to vector<8x128xi32>
    %54 = arith.cmpi slt, %52, %53 : vector<8x128xi32>
    %55 = vector.broadcast %40 : f32 to vector<8x128xf32>
    %56 = vector.broadcast %51 : f32 to vector<8x128xf32>
    %57 = arith.select %54, %55, %56 : vector<8x128xi1>, vector<8x128xf32>
    %c0_19 = arith.constant 0 : index
    %c0_20 = arith.constant 0 : index
    %c0_21 = arith.constant 0 : index
    %58 = vector.load %arg6[%c0_19, %c0_20, %c0_21] : memref<1x8x128xf32, #tpu.memory_space<vmem>>, vector<1x8x128xf32>
    %59 = vector.shape_cast %58 : vector<1x8x128xf32> to vector<8x128xf32>
    %60 = vector.shape_cast %57 : vector<8x128xf32> to vector<1x8x128xf32>
    tpu.vector_store %arg6[%c0_19, %c0_20, %c0_21], %60 {strides = array<i32>} : memref<1x8x128xf32, #tpu.memory_space<vmem>>, vector<1x8x128xf32>,
    return
  }
  func.func @transform_0(%arg0: i32) -> (i32, i32) {
    %c0_i32 = arith.constant 0 : i32
    %c0_i32_0 = arith.constant 0 : i32
    return %arg0, %c0_i32 : i32, i32
  }
  func.func @transform_1(%arg0: i32) -> (i32, i32) {
    %c0_i32 = arith.constant 0 : i32
    %c0_i32_0 = arith.constant 0 : i32
    return %arg0, %c0_i32 : i32, i32
  }
  func.func @transform_2(%arg0: i32) -> (i32, i32) {
    %c0_i32 = arith.constant 0 : i32
    %c0_i32_0 = arith.constant 0 : i32
    return %arg0, %c0_i32 : i32, i32
  }
  func.func @transform_3(%arg0: i32) -> (i32, i32) {
    %c0_i32 = arith.constant 0 : i32
    %c0_i32_0 = arith.constant 0 : i32
    %c0_i32_1 = arith.constant 0 : i32
    return %c0_i32, %c0_i32_0 : i32, i32
  }
  func.func @transform_4(%arg0: i32) -> (i32, i32) {
    %c0_i32 = arith.constant 0 : i32
    %c0_i32_0 = arith.constant 0 : i32
    %c0_i32_1 = arith.constant 0 : i32
    return %c0_i32, %c0_i32_0 : i32, i32
  }
  func.func @transform_5(%arg0: i32) -> (i32, i32, i32) {
    %c0_i32 = arith.constant 0 : i32
    %c0_i32_0 = arith.constant 0 : i32
    %c0_i32_1 = arith.constant 0 : i32
    return %arg0, %c0_i32, %c0_i32_0 : i32, i32, i32
  }
}

</mosaic_0001>

<bundles_post_ra>
// kernel: tpu_custom_call.1
= control target key start
LH: loop header
LB: loop body
LE: loop exit
PB: predicated region body
PF: predicated region fallthrough
CT: control target
= control target key end

     0   :  { %10 = vsyncpa [#allocation3], 0  ;;  %s1007_s0 = inlined_call_operand.vmem [shape: f32[64,32], index: 0, kind: input, shape index: {}]   ;;  %s1008_s1 = inlined_call_operand.vmem [shape: f32[64,32], index: 1, kind: input, shape index: {}]   ;;  %s1009_s2 = inlined_call_operand.vmem [shape: s32[64,1], index: 2, kind: input, shape index: {}]   ;;  %s1010_s3 = inlined_call_operand.vmem [shape: f32[32,4], index: 3, kind: input, shape index: {}]   ;;  %s1011_s4 = inlined_call_operand.vmem [shape: f32[1,4], index: 4, kind: input, shape index: {}]   ;;  %s1012_s5 = inlined_call_operand.hbm [shape: f32[4,8,128], index: 5, kind: output, shape index: {}]  }
   0x1   :  { %12 = vsyncpa [#allocation3 + $0x1], 0  ;;  %s863_s18 = smov 0   ;;  %s865_s19 = smov 0  }
   0x2   :  { %s867_s20 = smov 0   ;;  %s869_s21 = smov 0  }
   0x3 LB: > { %s884_s22 = sadd.s32 4294967295, %s829_s21   ;;  %s652_s23 = sadd.s32 4294967294, %s829_s21   ;;  %s829_s21 = sphi %s869_s21, %s1018_s21   ;;  %s825_s20 = sphi %s867_s20, %s1017_s20   ;;  %s821_s19 = sphi %s865_s19, %s1016_s19   ;;  %s817_s18 = sphi %s863_s18, %s1015_s18  }
   0x4   : > { %s888_s24 = sadd.s32 1, %s829_s21   ;;  %s145_s25 = sadd.s32 1, %s825_s20 }
   0x5   : > { %s142_s26 = ssub.s32 %s829_s21, %s888_s24  ;;  %p155_p0 = scmp.ne.s32.totalorder %s825_s20, %s821_s19 }
   0x6   : > { %p143_p1 = scmp.eq.s32.totalorder %s142_s26, 0  ;;  %p156_p2 = scmp.eq.s32.totalorder %s884_s22, 3 }
   0x7   : > { %p161_p3 = scmp.ne.s32.totalorder %s821_s19, %s817_s18  ;;  %p162_p4 = scmp.eq.s32.totalorder %s652_s23, 3 }
   0x8   : > { %s899_s27 = scalar_select %p143_p1, %s825_s20, %s145_s25  }
   0x9   : > { %p901_p5 = por %p156_p2, %p155_p0  ;;  %p905_p6 = por %p162_p4, %p161_p3 }
   0xa   : > { %p655_p7 = scmp.ge.s32.totalorder %s829_s21, 1  ;;  %p213_p8 = scmp.lt.s32.totalorder %s829_s21, 5 }
   0xc   : > { %p214_p9 = pnand %p655_p7, %p213_p8 }
   0xd   : > { %s657_s9 = sshll.u32 (!%p214_p9), %s884_s22, 1  ;;  %s666_s7 = sshll.u32 (!%p214_p9), %s884_s22, 4 }
   0xe   : > { %217 = sbr.rel (%p214_p9) target bundleno = 962 (0x3c2), region = 40  ;;  %p252_p10 = scmp.lt.s32.totalorder (!%p214_p9), %s657_s9, 7 }
   0xf   : > { %s248_s11 = sand.u32 (!%p214_p9), 1, %s821_s19   ;;  %s674_s15 = sshll.u32 (!%p214_p9), %s884_s22, 7 }
  0x10   : > { %s656_s12 = sshll.u32 (!%p214_p9), %s248_s11, 3  ;;  %s972_s30 = scalar_lea.hbm (!%p214_p9), %s1012_s5, %s674_s15 }
  0x11   : > { %s250_s16 = scalar_lea.vmem (!%p214_p9), [#allocation2], %s656_s12  ;;  %s832_s22 = smov (!%p214_p9), [#allocation2]  }
  0x12   : > { %s773_s8 = sshll.u32 (!%p214_p9), %s832_s22, 4  ;;  %s774_s8 = int_to_ptr.vmem [resolvable:$false] %s773_s8 }
  0x13   : > { %v274_v0 = vld [vmem:[%s1010_s3 + $0x18] sm:$0xff]  ;;  %v273_v1 = vld [vmem:[%s1010_s3 + $0x10] sm:$0xff]  ;;  %v272_v2 = vld [vmem:[%s1010_s3 + $0x8] sm:$0xff]  ;;  %s1020_s9 = smov (!%p252_p10, %s657_s9), 7  ;;  %vm286_vm0 = vcmask 261120   ;;  %vm368_vm1 = vcmask 31744   ;;  %v398_v28 = vlaneseq  ;;  %v401_v30 = vstv %s666_s7 }
  0x14   : > { %689 = vmatprep.subr.mxu0 %v274_v0  ;;  %v271_v3 = vld [vmem:[%s1010_s3] sm:$0xff]  ;;  %s924_s14 = sshll.u32 %s1020_s9, 3  ;;  %700 = vmatprep.subr.msk.mxu1 %vm368_vm1, %v274_v0  ;;  %v831_v13 = vmov 0   ;;  %s775_s9 = scalar_lea.vmem %s774_s8, 256 }
  0x15   : > { %690 = vmatpush3.msra.mxu0 %v274_v0  ;;  %s255_s17 = scalar_lea.vmem %s1007_s0, %s924_s14  ;;  %701 = vmatpush3.xpose.msk.msra.mxu1 %vm368_vm1, %v274_v0  ;;  %v663_v7 = vld [vmem:[%s1011_s4] ss:$0 sm:$0xff]  ;;  %s267_s6 = scalar_lea.vmem %s1009_s2, %s924_s14  ;;  %v399_v29 = vshrl.u32 %v398_v28, 7  ;;  %v952_v33 = vand.u32 127, %v398_v28 }
  0x16   : > { %691 = vmatprep.subr.mxu0 %v273_v1  ;;  %v269_v4 = vld [vmem:[%s255_s17] sm:$0xff]  ;;  %v270_v5 = vld [vmem:[%s255_s17 + $0x8] sm:$0xff]  ;;  %702 = vmatprep.subr.msk.mxu1 %vm368_vm1, %v273_v1  ;;  %s261_s10 = scalar_lea.vmem %s1008_s1, %s924_s14  ;;  %s569_s17 = sshll.u32 %s250_s16, 4  ;;  %s570_s17 = int_to_ptr.vmem [resolvable:$true] %s569_s17 }
  0x17   : > { %692 = vmatpush3.msra.mxu0 %v273_v1  ;;  %697 = vmatprep.mubr.msk.f32.mxu0 %vm286_vm0, %v269_v4  ;;  %v278_v14 = vld [vmem:[%s267_s6] sm:$0xff]  ;;  %v279_v25 = vld [vmem:[%s267_s6 + $0x8] sm:$0xff]  ;;  %v400_v31 = vadd.s32 8, %v399_v29  ;;  %v402_v32 = vadd.s32 %v401_v30, %v399_v29  ;;  %vm550_vm8 = vcmp.lt.s32.totalorder %v952_v33, 64  ;;  %s556_s6 = scalar_lea.sflag [#allocation3], %s248_s11  ;;  %s769_s7 = scalar_lea.vmem %s570_s17, 128 }
  0x18   : > { %693 = vmatprep.subr.mxu0 %v272_v2  ;;  %755 = vset.pattern.permute.xlu0 %v831_v13  ;;  %v276_v63 = vld [vmem:[%s261_s10 + $0x8] sm:$0xff]  ;;  %p770_p11 = scmp.ne.s32.totalorder %s570_s17, %s769_s7  ;;  %p776_p0 = scmp.lt.s32.totalorder %s570_s17, %s774_s8 }
  0x19   : > { %694 = vmatpush3.msra.mxu0 %v272_v2  ;;  %703 = vmatpush3.xpose.msk.msra.mxu1 %vm368_vm1, %v273_v1  ;;  %v403_v36 = vadd.s32 %v401_v30, %v400_v31  ;;  %vm404_vm2 = vcmp.lt.s32.totalorder %v402_v32, 64  ;;  %v275_v1 = vld [vmem:[%s261_s10] sm:$0xff]  ;;  %p777_p1 = scmp.lt.s32.totalorder %s775_s9, %s769_s7 }
  0x1a   : > { %695 = vmatprep.subr.mxu0 %v271_v3  ;;  %704 = vmatprep.subr.msk.mxu1 %vm368_vm1, %v272_v2  ;;  %p771_p12 = pnand %p770_p11, %p901_p5 }
  0x1b   : > { %696 = vmatpush3.msra.mxu0 %v271_v3  ;;  %756 = vset.pattern.permute.xlu1 %v831_v13  ;;  %vm405_vm4 = vcmp.lt.s32.totalorder %v403_v36, 64  ;;  %p778_p2 = por %p777_p1, %p776_p0 }
  0x1c   : > { %698 = vmatmul.mubr.msk.f32.vlgmr.msra.gmra.mxu0 %vm286_vm0, %v270_v5  ;;  %p772_p13 = pneg %p771_p12 }
  0x1d   : > { %705 = vmatpush3.xpose.msk.msra.mxu1 %vm368_vm1, %v272_v2 }
  0x1e   : > { %706 = vmatprep.subr.msk.mxu1 %vm368_vm1, %v271_v3  ;;  %p779_p3 = pnand %p778_p2, %p772_p13 }
  0x21   : > { %707 = vmatpush3.xpose.msk.msra.mxu1 %vm368_vm1, %v271_v3 }
  0xdc   : > { %v699_v6 = vpop.f32.mrf.mxu0 }
  0xdd   : > { %v365_v10 = vadd.f32 %v699_v6, %v663_v7 }
  0xde   : > { %v359_v8 = vpop.f32.mrf.mxu0 }
  0xdf   : > { %v360_v9 = vadd.f32 %v663_v7, %v359_v8  ;;  %v372_v12 = vsel %vm368_vm1, %v365_v10, -inf }
  0xe1   : > { %v369_v11 = vsel %vm368_vm1, %v360_v9, -inf }
  0xe2   : > { %370 = vmax.xlane.f32.xlu0 %v369_v11 }
  0xe6   : > { %373 = vmax.xlane.f32.xlu0 %v372_v12 }
  0xfc   : > { %409 = vperm.xlu0 %755, %v278_v14  }
 0x16b   : > { %v371_v15 = vpop.xlane.xlu0 %370 }
 0x16c   : > { %v375_v16 = vsub.f32 %v360_v9, %v371_v15 }
 0x16e   : > { %v377_v17 = vmul.f32 1.442695, %v375_v16 }
 0x16f   : > { %v374_v18 = vpop.xlane.xlu0 %373 }
 0x170   : > { %757 = vpow2.f32 %v377_v17  ;;  %v376_v19 = vsub.f32 %v365_v10, %v374_v18 }
 0x172   : > { %v379_v20 = vmul.f32 1.442695, %v376_v19 }
 0x174   : > { %759 = vpow2.f32 %v379_v20 }
 0x177   : > { %v410_v34 = vpop.permute.xlu0 %409 }
 0x178   : > { %vm414_vm3 = vcmp.eq.s32.totalorder %v952_v33, %v410_v34 }
 0x179   : > { %vm420_vm6 = vmand %vm414_vm3, %vm404_vm2 }
 0x17d   : > { %v758_v21 = vpop.eup %757 }
 0x17e   : > { %v381_v22 = vsel %vm368_vm1, %v758_v21, 0.0 }
 0x17f   : > { %382 = vadd.xlane.f32.xlu1 %v381_v22 }
 0x181   : > { %v760_v23 = vpop.eup %759 }
 0x182   : > { %v384_v24 = vsel %vm368_vm1, %v760_v23, 0.0 }
 0x183   : > { %385 = vadd.xlane.f32.xlu1 %v384_v24 }
 0x194   : > { %412 = vperm.xlu1 %756, %v279_v25  }
 0x208   : > { %v383_v26 = vpop.xlane.xlu1 %382 }
 0x209   : > { %761 = vrcp.f32 %v383_v26 }
 0x20a   : > { %763 = vlog2.f32 %v383_v26 }
 0x20c   : > { %v386_v27 = vpop.xlane.xlu1 %385 }
 0x20d   : > { %765 = vrcp.f32 %v386_v27 }
 0x20e   : > { %767 = vlog2.f32 %v386_v27 }
 0x210   : > { %v413_v38 = vpop.permute.xlu1 %412 }
 0x211   : > { %vm415_vm5 = vcmp.eq.s32.totalorder %v952_v33, %v413_v38 }
 0x212   : > { %vm421_vm7 = vmand %vm415_vm5, %vm405_vm4 }
 0x216   : > { %v762_v35 = vpop.eup %761 }
 0x217   : > { %v764_v37 = vpop.eup %763  ;;  %v389_v39 = vmul.f32 %v762_v35, %v758_v21 }
 0x218   : > { %v392_v40 = vmul.f32 0.6931472, %v764_v37 }
 0x219   : > { %v437_v41 = vmul.f32 4.0, %v389_v39 }
 0x21a   : > { %v766_v42 = vpop.eup %765  ;;  %v395_v43 = vsub.f32 %v375_v16, %v392_v40 }
 0x21b   : > { %v768_v44 = vpop.eup %767  ;;  %v439_v45 = vsub.f32 1.0, %v437_v41  ;;  %v390_v46 = vmul.f32 %v766_v42, %v760_v23 }
 0x21c   : > { %v394_v47 = vmul.f32 0.6931472, %v768_v44  ;;  %v422_v49 = vsel %vm420_vm6, %v395_v43, 0.0 }
 0x21d   : > { %708 = vmatprep.mubr.msk.f32.mxu1 %vm368_vm1, %v439_v45  ;;  %v438_v48 = vmul.f32 4.0, %v390_v46  ;;  %v424_v53 = vsel %vm368_vm1, %v422_v49, 0.0 }
 0x21e   : > { %v396_v50 = vsub.f32 %v376_v19, %v394_v47 }
 0x21f   : > { %v440_v51 = vsub.f32 1.0, %v438_v48 }
 0x220   : > { %v423_v52 = vsel %vm421_vm7, %v396_v50, 0.0 }
 0x221   : > { %709 = vmatmul.mubr.msk.f32.vlgmr.msra.gmra.mxu1 %vm368_vm1, %v440_v51  ;;  %v425_v54 = vsel %vm368_vm1, %v423_v52, 0.0 }
 0x222   : > { %v426_v55 = vadd.f32 %v425_v54, %v424_v53 }
 0x224   : > { %427 = vadd.xlane.f32.xlu1 %v426_v55 }
 0x2ad   : > { %v428_v56 = vpop.xlane.xlu1 %427 }
 0x2ae   : > { %v429_v57 = vrot.slane %v428_v56, 4 }
 0x2b0   : > { %v430_v58 = vadd.f32 %v429_v57, %v428_v56 }
 0x2b2   : > { %v431_v59 = vrot.slane %v430_v58, 2 }
 0x2b4   : > { %v432_v60 = vadd.f32 %v431_v59, %v430_v58 }
 0x2b6   : > { %v433_v61 = vrot.slane %v432_v60, 1 }
 0x2b8   : > { %v434_v62 = vadd.f32 %v433_v61, %v432_v60 }
 0x2ba   : > { %711 = vpush %v434_v62 }
 0x2e1   : > { %v710_v0 = vpop.f32.mrf.mxu1 }
 0x2e2   : > { %v535_v2 = vmul.f32 %v710_v0, %v276_v63 }
 0x2e3   : > { %v525_v3 = vpop.f32.mrf.mxu1 }
 0x2e4   : > { %v537_v4 = vmul.f32 %v710_v0, %v535_v2  ;;  %v534_v5 = vmul.f32 %v525_v3, %v275_v1 }
 0x2e6   : > { %v536_v6 = vmul.f32 %v534_v5, %v525_v3  ;;  %v539_v8 = vsel %vm286_vm0, %v537_v4, 0.0 }
 0x2e8   : > { %v538_v7 = vsel %vm286_vm0, %v536_v6, 0.0 }
 0x2e9   : > { %v540_v9 = vadd.f32 %v539_v8, %v538_v7 }
 0x2eb   : > { %541 = vadd.xlane.f32.xlu0 %v540_v9  ;;  %s712_s13 = spop %711 }
 0x2ec   : > { %s436_s14 = ssub.f32 0.0, %s712_s13 }
 0x2ee   : > { %v551_v17 = vstv %s436_s14 }
 0x374   : > { %v542_v10 = vpop.xlane.xlu0 %541 }
 0x375   : > { %v543_v11 = vrot.slane %v542_v10, 4 }
 0x377   : > { %v544_v12 = vadd.f32 %v543_v11, %v542_v10 }
 0x379   : > { %v545_v13 = vrot.slane %v544_v12, 2 }
 0x37b   : > { %v546_v14 = vadd.f32 %v545_v13, %v544_v12 }
 0x37d   : > { %v547_v15 = vrot.slane %v546_v14, 1 }
 0x37f   : > { %v548_v16 = vadd.f32 %v547_v15, %v546_v14 }
 0x381   : > { %713 = vpush %v548_v16 }
 0x3b2   : > { %s714_s23 = spop %713 }
 0x3b3   : > { %v552_v18 = vstv %s714_s23 }
 0x3b4   : > { %v553_v19 = vsel %vm550_vm8, %v551_v17, %v552_v18 }
 0x3b5   : > { %554 = vst [vmem:[%s250_s16] sm:$0xff] %v553_v19 }
 0x3b6   : > { %782 = shalt.err (!%p779_p3)
}
 0x3b7   : > { %s783_s10 = scalar_lea.hbm %s972_s30, 128  ;;  %s787_s13 = scalar_lea.hbm %s1012_s5, 512 }
 0x3b8   : > { %p784_p4 = scmp.ne.s32.totalorder %s972_s30, %s783_s10  ;;  %p788_p9 = scmp.lt.s32.totalorder %s972_s30, %s1012_s5 }
 0x3b9   : > { %p789_p10 = scmp.lt.s32.totalorder %s787_s13, %s783_s10 }
 0x3ba   : > { %p785_p7 = pnand %p784_p4, %p901_p5 }
 0x3bb   : > { %p790_p11 = por %p789_p10, %p788_p9 }
 0x3bc   : > { %p786_p8 = pneg %p785_p7 }
 0x3be   : > { %p791_p12 = pnand %p790_p11, %p786_p8 }
 0x3c0   : > { %794 = shalt.err (!%p791_p12)
}
 0x3c1   : > { %715 = dma.vmem_to_hbm [thread:$0]  (%p901_p5), %s570_s17, 128, %s972_s30, %s556_s6  }
 0x3c2 PF: > { %p721_p13 = scmp.ge.s32.totalorder %s829_s21, 2  ;;  %s581_s16 = sand.u32 1, %s817_s18  }
 0x3c3   : > { %s582_s23 = scalar_lea.sflag [#allocation3], %s581_s16 }
 0x3c4   : > { %p718_p0 = pnand %p721_p13, %p905_p6 }
 0x3c6   : > { %p719_p1 = pneg %p718_p0 }
 0x3c8   : > { %812 = dma.done.wait (%p719_p1), %s582_s23, 128  }
 0x3c9   : > { %814 = vsyncadd (%p719_p1), %s582_s23, 4294967168  ;;  %p15_p2 = scmp.ge.s32.totalorder %s888_s24, 6   ;;  %s1015_s18 = smov %s821_s19 }
 0x3ca   : > { %s1016_s19 = smov %s825_s20  ;;  %s1017_s20 = smov %s899_s27 }
 0x3cb   : > { %s1018_s21 = smov %s888_s24  ;;  %17 = sbr.rel (!%p15_p2) target bundleno = 3 (0x3), region = 81 }
 0x3d0   :  { %587 = vsyncpa [#allocation3], 1 }
 0x3d1   :  { %589 = vsyncpa [#allocation3 + $0x1], 1 }

</bundles_post_ra>
